<compile_context>
chip_gen: v5e
topology: v5e:2x2
jax: 0.10.0
libtpu: 0.0.40
codegen_flags: <defaults>
</compile_context>

<pallas_src>
import functools

import jax
import jax.numpy as jnp
from jax.experimental import pallas as pl
from jax.experimental.pallas import tpu as pltpu

M1 = 0.2
M2 = 0.1
G = 9.8
ETA = 0.1  # `args.eta` in the reference script is a CLI arg; fixed deterministically here.
# TODO(synk): `t` argument of forward() is unused by the computation and is dropped.

_LANES = 128


def pendulum_kernel(x_ref, field_ref):
    # x_ref / field_ref: (4, TR, 128) f32 tiles. First axis = (q1, q2, p1, p2).
    q1 = x_ref[0]
    q2 = x_ref[1]
    p1 = x_ref[2]
    p2 = x_ref[3]

    u = q1 - q2
    c = jnp.cos(u)
    s = jnp.sin(u)

    # Hamiltonian kinetic term N/D.
    N = M2 * p1 * p1 + (M1 + M2) * p2 * p2 - 2.0 * M2 * p1 * p2 * c
    D = 2.0 * M2 * (M1 + M2 * s * s)
    inv_D = 1.0 / D  # exact divide; padded-zero rows give D = 2*m2*m1 > 0.

    # Analytic gradient of H.
    dN_dq1 = 2.0 * M2 * p1 * p2 * s
    dD_dq1 = 4.0 * M2 * M2 * s * c
    kin_q1 = (dN_dq1 - N * dD_dq1 * inv_D) * inv_D  # d(N/D)/dq1 ; d(N/D)/dq2 = -kin_q1

    dHq1 = kin_q1 + (M1 + M2) * G * jnp.sin(q1)
    dHq2 = -kin_q1 + M2 * G * jnp.sin(q2)
    dHp1 = 2.0 * M2 * (p1 - p2 * c) * inv_D
    dHp2 = 2.0 * ((M1 + M2) * p2 - M2 * p1 * c) * inv_D

    # field = dH @ M.T with dH[:,0:2] zeroed, minus eta*dH — written per coordinate row.
    field_ref[0] = dHp1
    field_ref[1] = dHp2
    field_ref[2] = -dHq1 - ETA * dHp1
    field_ref[3] = -dHq2 - ETA * dHp2


@functools.partial(jax.jit, static_argnames=("tile_rows",))
def ode_d_pendulum_field(x, *, tile_rows=1024):
    """x: (B, 4) float32 (PyTorch layout). Returns field: (B, 4) float32."""
    B = x.shape[0]
    # Number of (sublane) rows of 128 lanes needed to hold B samples.
    S = pl.cdiv(B, _LANES)
    tr = min(tile_rows, S)                 # single block when B is small
    S_pad = pl.cdiv(S, tr) * tr            # multiple of the tile row count
    b_pad = S_pad * _LANES

    xt = x.T                               # (4, B); fuses with the pad below under jit
    if b_pad != B:
        xt = jnp.pad(xt, ((0, 0), (0, b_pad - B)))
    x3 = xt.reshape(4, S_pad, _LANES)

    field3 = pl.pallas_call(
        pendulum_kernel,
        out_shape=jax.ShapeDtypeStruct((4, S_pad, _LANES), x.dtype),
        grid_spec=pltpu.PrefetchScalarGridSpec(
            num_scalar_prefetch=0,
            grid=(S_pad // tr,),
            in_specs=[pl.BlockSpec((4, tr, _LANES), lambda i: (0, i, 0))],
            out_specs=pl.BlockSpec((4, tr, _LANES), lambda i: (0, i, 0)),
        ),
        compiler_params=pltpu.CompilerParams(dimension_semantics=("parallel",)),
    )(x3)

    return field3.reshape(4, b_pad)[:, :B].T


def _hamiltonian(q1, q2, p1, p2):
    c = jnp.cos(q1 - q2)
    s = jnp.sin(q1 - q2)
    num = M2 * p1 ** 2 + (M1 + M2) * p2 ** 2 - 2.0 * M2 * p1 * p2 * c
    den = 2.0 * M2 * (M1 + M2 * s ** 2)
    return num / den - (M1 + M2) * G * jnp.cos(q1) - M2 * G * jnp.cos(q2)


def _reference_field(x):
    """Pure-JAX reference with identical semantics (autograd-based, for a sanity check)."""
    def H_sum(xx):
        return jnp.sum(_hamiltonian(xx[:, 0], xx[:, 1], xx[:, 2], xx[:, 3]))

    dH = jax.grad(H_sum)(x)
    Mmat = jnp.array(
        [[0.0, 0.0, 1.0, 0.0],
         [0.0, 0.0, 0.0, 1.0],
         [-1.0, 0.0, 0.0, 0.0],
         [0.0, -1.0, 0.0, 0.0]], dtype=x.dtype)
    field = dH @ Mmat.T
    dH = dH.at[:, 0].set(0.0).at[:, 1].set(0.0)
    return field - ETA * dH


if __name__ == "__main__":
    key = jax.random.PRNGKey(0)

    # Small case (single (4,1,128) block, tail padding).
    B = 8
    x = jax.random.normal(key, (B, 4), dtype=jnp.float32)
    field = ode_d_pendulum_field(x)
    jax.block_until_ready(field)
    ref = _reference_field(x)
    assert field.shape == (B, 4) and field.dtype == jnp.float32
    assert jnp.allclose(field, ref, rtol=1e-4, atol=1e-4), "mismatch vs reference (B=8)"

    # Slightly larger case exercising padding + multiple sublane rows.
    B2 = 300
    x2 = jax.random.normal(jax.random.PRNGKey(1), (B2, 4), dtype=jnp.float32)
    field2 = ode_d_pendulum_field(x2)
    jax.block_until_ready(field2)
    ref2 = _reference_field(x2)
    assert jnp.allclose(field2, ref2, rtol=1e-4, atol=1e-4), "mismatch vs reference (B=300)"

    # Case exercising a multi-step grid (small tile_rows forces grid=2).
    B3 = 2048
    x3 = jax.random.normal(jax.random.PRNGKey(2), (B3, 4), dtype=jnp.float32)
    field3 = ode_d_pendulum_field(x3, tile_rows=8)
    jax.block_until_ready(field3)
    ref3 = _reference_field(x3)
    assert jnp.allclose(field3, ref3, rtol=1e-4, atol=1e-4), "mismatch vs reference (B=2048)"

    print("KERNEL_OK")
</pallas_src>

<mosaic_0001>
module attributes {stable_mosaic.version = 11 : i64} {
  func.func @pendulum_kernel(%arg0: i32, %arg1: memref<4x1x128xf32, #tpu.memory_space<vmem>>, %arg2: memref<4x1x128xf32, #tpu.memory_space<vmem>>) attributes {dimension_semantics = [#tpu.dimension_semantics<parallel>], iteration_bounds = array<i64: 1>, scalar_prefetch = 0 : i64, scratch_operands = 0 : i64, tpu.core_type = #tpu.core_type<tc>, window_params = [{transform_indices = @transform_0, window_bounds = array<i64: 4, 1, 128>}, {transform_indices = @transform_1, window_bounds = array<i64: 4, 1, 128>}]} {
    %c0 = arith.constant 0 : index
    %c0_0 = arith.constant 0 : index
    %c0_1 = arith.constant 0 : index
    %0 = vector.load %arg1[%c0, %c0_0, %c0_1] : memref<4x1x128xf32, #tpu.memory_space<vmem>>, vector<1x1x128xf32>
    %1 = vector.shape_cast %0 : vector<1x1x128xf32> to vector<1x128xf32>
    %c1 = arith.constant 1 : index
    %c0_2 = arith.constant 0 : index
    %c0_3 = arith.constant 0 : index
    %2 = vector.load %arg1[%c1, %c0_2, %c0_3] : memref<4x1x128xf32, #tpu.memory_space<vmem>>, vector<1x1x128xf32>
    %3 = vector.shape_cast %2 : vector<1x1x128xf32> to vector<1x128xf32>
    %c2 = arith.constant 2 : index
    %c0_4 = arith.constant 0 : index
    %c0_5 = arith.constant 0 : index
    %4 = vector.load %arg1[%c2, %c0_4, %c0_5] : memref<4x1x128xf32, #tpu.memory_space<vmem>>, vector<1x1x128xf32>
    %5 = vector.shape_cast %4 : vector<1x1x128xf32> to vector<1x128xf32>
    %c3 = arith.constant 3 : index
    %c0_6 = arith.constant 0 : index
    %c0_7 = arith.constant 0 : index
    %6 = vector.load %arg1[%c3, %c0_6, %c0_7] : memref<4x1x128xf32, #tpu.memory_space<vmem>>, vector<1x1x128xf32>
    %7 = vector.shape_cast %6 : vector<1x1x128xf32> to vector<1x128xf32>
    %8 = arith.subf %1, %3 : vector<1x128xf32>
    %9 = math.cos %8 : vector<1x128xf32>
    %10 = math.sin %8 : vector<1x128xf32>
    %cst = arith.constant 1.000000e-01 : f32
    %11 = vector.broadcast %cst : f32 to vector<1x128xf32>
    %12 = arith.mulf %11, %5 : vector<1x128xf32>
    %13 = arith.mulf %12, %5 : vector<1x128xf32>
    %cst_8 = arith.constant 3.000000e-01 : f32
    %14 = vector.broadcast %cst_8 : f32 to vector<1x128xf32>
    %15 = arith.mulf %14, %7 : vector<1x128xf32>
    %16 = arith.mulf %15, %7 : vector<1x128xf32>
    %17 = arith.addf %13, %16 : vector<1x128xf32>
    %cst_9 = arith.constant 2.000000e-01 : f32
    %18 = vector.broadcast %cst_9 : f32 to vector<1x128xf32>
    %19 = arith.mulf %18, %5 : vector<1x128xf32>
    %20 = arith.mulf %19, %7 : vector<1x128xf32>
    %21 = arith.mulf %20, %9 : vector<1x128xf32>
    %22 = arith.subf %17, %21 : vector<1x128xf32>
    %cst_10 = arith.constant 1.000000e-01 : f32
    %23 = vector.broadcast %cst_10 : f32 to vector<1x128xf32>
    %24 = arith.mulf %23, %10 : vector<1x128xf32>
    %25 = arith.mulf %24, %10 : vector<1x128xf32>
    %cst_11 = arith.constant 2.000000e-01 : f32
    %26 = vector.broadcast %cst_11 : f32 to vector<1x128xf32>
    %27 = arith.addf %26, %25 : vector<1x128xf32>
    %cst_12 = arith.constant 2.000000e-01 : f32
    %28 = vector.broadcast %cst_12 : f32 to vector<1x128xf32>
    %29 = arith.mulf %28, %27 : vector<1x128xf32>
    %cst_13 = arith.constant 1.000000e+00 : f32
    %30 = vector.broadcast %cst_13 : f32 to vector<1x128xf32>
    %31 = arith.divf %30, %29 : vector<1x128xf32>
    %cst_14 = arith.constant 2.000000e-01 : f32
    %32 = vector.broadcast %cst_14 : f32 to vector<1x128xf32>
    %33 = arith.mulf %32, %5 : vector<1x128xf32>
    %34 = arith.mulf %33, %7 : vector<1x128xf32>
    %35 = arith.mulf %34, %10 : vector<1x128xf32>
    %cst_15 = arith.constant 4.000000e-02 : f32
    %36 = vector.broadcast %cst_15 : f32 to vector<1x128xf32>
    %37 = arith.mulf %36, %10 : vector<1x128xf32>
    %38 = arith.mulf %37, %9 : vector<1x128xf32>
    %39 = arith.mulf %22, %38 : vector<1x128xf32>
    %40 = arith.mulf %39, %31 : vector<1x128xf32>
    %41 = arith.subf %35, %40 : vector<1x128xf32>
    %42 = arith.mulf %41, %31 : vector<1x128xf32>
    %43 = math.sin %1 : vector<1x128xf32>
    %cst_16 = arith.constant 2.940000e+00 : f32
    %44 = vector.broadcast %cst_16 : f32 to vector<1x128xf32>
    %45 = arith.mulf %44, %43 : vector<1x128xf32>
    %46 = arith.addf %42, %45 : vector<1x128xf32>
    %cst_17 = arith.constant 0.000000e+00 : f32
    %47 = vector.broadcast %cst_17 : f32 to vector<1x128xf32>
    %48 = arith.subf %47, %42 : vector<1x128xf32>
    %49 = math.sin %3 : vector<1x128xf32>
    %cst_18 = arith.constant 9.800000e-01 : f32
    %50 = vector.broadcast %cst_18 : f32 to vector<1x128xf32>
    %51 = arith.mulf %50, %49 : vector<1x128xf32>
    %52 = arith.addf %48, %51 : vector<1x128xf32>
    %53 = arith.mulf %7, %9 : vector<1x128xf32>
    %54 = arith.subf %5, %53 : vector<1x128xf32>
    %cst_19 = arith.constant 2.000000e-01 : f32
    %55 = vector.broadcast %cst_19 : f32 to vector<1x128xf32>
    %56 = arith.mulf %55, %54 : vector<1x128xf32>
    %57 = arith.mulf %56, %31 : vector<1x128xf32>
    %cst_20 = arith.constant 3.000000e-01 : f32
    %58 = vector.broadcast %cst_20 : f32 to vector<1x128xf32>
    %59 = arith.mulf %58, %7 : vector<1x128xf32>
    %cst_21 = arith.constant 1.000000e-01 : f32
    %60 = vector.broadcast %cst_21 : f32 to vector<1x128xf32>
    %61 = arith.mulf %60, %5 : vector<1x128xf32>
    %62 = arith.mulf %61, %9 : vector<1x128xf32>
    %63 = arith.subf %59, %62 : vector<1x128xf32>
    %cst_22 = arith.constant 2.000000e+00 : f32
    %64 = vector.broadcast %cst_22 : f32 to vector<1x128xf32>
    %65 = arith.mulf %64, %63 : vector<1x128xf32>
    %66 = arith.mulf %65, %31 : vector<1x128xf32>
    %c0_23 = arith.constant 0 : index
    %c0_24 = arith.constant 0 : index
    %c0_25 = arith.constant 0 : index
    %67 = vector.load %arg2[%c0_23, %c0_24, %c0_25] : memref<4x1x128xf32, #tpu.memory_space<vmem>>, vector<1x1x128xf32>
    %68 = vector.shape_cast %67 : vector<1x1x128xf32> to vector<1x128xf32>
    %69 = vector.shape_cast %57 : vector<1x128xf32> to vector<1x1x128xf32>
    tpu.vector_store %arg2[%c0_23, %c0_24, %c0_25], %69 {strides = array<i32>} : memref<4x1x128xf32, #tpu.memory_space<vmem>>, vector<1x1x128xf32>,
    %c1_26 = arith.constant 1 : index
    %c0_27 = arith.constant 0 : index
    %c0_28 = arith.constant 0 : index
    %70 = vector.load %arg2[%c1_26, %c0_27, %c0_28] : memref<4x1x128xf32, #tpu.memory_space<vmem>>, vector<1x1x128xf32>
    %71 = vector.shape_cast %70 : vector<1x1x128xf32> to vector<1x128xf32>
    %72 = vector.shape_cast %66 : vector<1x128xf32> to vector<1x1x128xf32>
    tpu.vector_store %arg2[%c1_26, %c0_27, %c0_28], %72 {strides = array<i32>} : memref<4x1x128xf32, #tpu.memory_space<vmem>>, vector<1x1x128xf32>,
    %cst_29 = arith.constant 0.000000e+00 : f32
    %73 = vector.broadcast %cst_29 : f32 to vector<1x128xf32>
    %74 = arith.subf %73, %46 : vector<1x128xf32>
    %cst_30 = arith.constant 1.000000e-01 : f32
    %75 = vector.broadcast %cst_30 : f32 to vector<1x128xf32>
    %76 = arith.mulf %75, %57 : vector<1x128xf32>
    %77 = arith.subf %74, %76 : vector<1x128xf32>
    %c2_31 = arith.constant 2 : index
    %c0_32 = arith.constant 0 : index
    %c0_33 = arith.constant 0 : index
    %78 = vector.load %arg2[%c2_31, %c0_32, %c0_33] : memref<4x1x128xf32, #tpu.memory_space<vmem>>, vector<1x1x128xf32>
    %79 = vector.shape_cast %78 : vector<1x1x128xf32> to vector<1x128xf32>
    %80 = vector.shape_cast %77 : vector<1x128xf32> to vector<1x1x128xf32>
    tpu.vector_store %arg2[%c2_31, %c0_32, %c0_33], %80 {strides = array<i32>} : memref<4x1x128xf32, #tpu.memory_space<vmem>>, vector<1x1x128xf32>,
    %cst_34 = arith.constant 0.000000e+00 : f32
    %81 = vector.broadcast %cst_34 : f32 to vector<1x128xf32>
    %82 = arith.subf %81, %52 : vector<1x128xf32>
    %cst_35 = arith.constant 1.000000e-01 : f32
    %83 = vector.broadcast %cst_35 : f32 to vector<1x128xf32>
    %84 = arith.mulf %83, %66 : vector<1x128xf32>
    %85 = arith.subf %82, %84 : vector<1x128xf32>
    %c3_36 = arith.constant 3 : index
    %c0_37 = arith.constant 0 : index
    %c0_38 = arith.constant 0 : index
    %86 = vector.load %arg2[%c3_36, %c0_37, %c0_38] : memref<4x1x128xf32, #tpu.memory_space<vmem>>, vector<1x1x128xf32>
    %87 = vector.shape_cast %86 : vector<1x1x128xf32> to vector<1x128xf32>
    %88 = vector.shape_cast %85 : vector<1x128xf32> to vector<1x1x128xf32>
    tpu.vector_store %arg2[%c3_36, %c0_37, %c0_38], %88 {strides = array<i32>} : memref<4x1x128xf32, #tpu.memory_space<vmem>>, vector<1x1x128xf32>,
    return
  }
  func.func @transform_0(%arg0: i32) -> (i32, i32, i32) {
    %c0_i32 = arith.constant 0 : i32
    %c0_i32_0 = arith.constant 0 : i32
    %c0_i32_1 = arith.constant 0 : i32
    return %c0_i32, %arg0, %c0_i32_0 : i32, i32, i32
  }
  func.func @transform_1(%arg0: i32) -> (i32, i32, i32) {
    %c0_i32 = arith.constant 0 : i32
    %c0_i32_0 = arith.constant 0 : i32
    %c0_i32_1 = arith.constant 0 : i32
    return %c0_i32, %arg0, %c0_i32_0 : i32, i32, i32
  }
}

</mosaic_0001>

<bundles_post_ra>
// kernel: ode_d_pendulum_field.1
= control target key start
LH: loop header
LB: loop body
LE: loop exit
PB: predicated region body
PF: predicated region fallthrough
CT: control target
= control target key end

     0   :  { %v727_v22 = vmov 683565275   ;;  %v728_v24 = vmov 2475754826   ;;  %v729_v26 = vmov 2131351028   ;;  %s1110_s0 = inlined_call_operand.vmem [shape: f32[4,1,128], index: 0, kind: input, shape index: {}]   ;;  %s1111_s1 = inlined_call_operand.vmem [shape: f32[4,1,128], index: 1, kind: output, shape index: {}]  }
   0x1   :  { %v747_v0 = vld [vmem:[%s1110_s0] sm:$0x1]  ;;  %v752_v1 = vld [vmem:[%s1110_s0 + $0x1] sm:$0x1]  ;;  %v730_v28 = vmov 2102212464  }
   0x2   :  { %v756_v2 = vsub.f32 %v747_v0, %v752_v1  ;;  %v363_v5 = vand.u32 2139095040, %v747_v0  ;;  %v521_v20 = vand.u32 2139095040, %v752_v1  ;;  %v731_v30 = vmov 920167782  }
   0x3   :  { %v732_v38 = vmov 1326507024   ;;  %v360_v43 = vand.u32 2147483647, %v747_v0 }
   0x4   :  { %v16_v3 = vand.u32 2147483647, %v756_v2  ;;  %v19_v4 = vand.u32 2139095040, %v756_v2  ;;  %v364_v8 = vshrl.u32 %v363_v5, 23 }
   0x5   :  { %v789_v54 = vand.u32 8388607, %v360_v43 }
   0x6   :  { %v20_v6 = vshrl.u32 %v19_v4, 23  ;;  %v23_v7 = vand.u32 8388607, %v16_v3  ;;  %v709_v11 = vadd.s32 4294967169, %v364_v8 }
   0x8   :  { %v703_v9 = vadd.s32 4294967169, %v20_v6  ;;  %v24_v10 = vor.u32 8388608, %v23_v7  ;;  %v370_v14 = vadd.s32 1, %v709_v11  ;;  %v368_v7 = vor.u32 8388608, %v789_v54 }
   0xa   :  { %v26_v12 = vadd.s32 1, %v703_v9  ;;  %v763_v13 = vshll.u32 %v24_v10, 8  ;;  %vm371_vm1 = vcmp.gt.s32.totalorder %v370_v14, 0 }
   0xb   :  { %v372_v18 = vsel %vm371_vm1, %v370_v14, 0 }
   0xc   :  { %vm27_vm0 = vcmp.gt.s32.totalorder %v26_v12, 0  ;;  %v65_v19 = vand.u32 65535, %v763_v13  ;;  %v772_v32 = vand.u32 31, %v372_v18  ;;  %v66_v57 = vshrl.u32 %v763_v13, 16 }
   0xd   :  { %v28_v15 = vsel %vm27_vm0, %v26_v12, 0  ;;  %v792_v58 = vshrl.u32 %v372_v18, 5 }
   0xe   :  { %v29_v16 = vshrl.u32 %v28_v15, 5  ;;  %v30_v17 = vand.u32 31, %v28_v15  ;;  %v782_v46 = vsub.s32 32, %v772_v32  ;;  %v377_v62 = vshll.u32 %v727_v22, %v772_v32 }
   0xf   :  { %v380_v9 = vshll.u32 %v728_v24, %v772_v32  ;;  %v383_v15 = vshll.u32 %v729_v26, %v772_v32  ;;  %vm392_vm10 = vcmp.lt.s32.totalorder %v792_v58, 1  ;;  %vm394_vm11 = vcmp.lt.s32.totalorder %v792_v58, 3 }
  0x10   :  { %v31_v21 = vsub.s32 32, %v30_v17  ;;  %v33_v23 = vshll.u32 %v727_v22, %v30_v17  ;;  %v36_v25 = vshll.u32 %v728_v24, %v30_v17  ;;  %v39_v27 = vshll.u32 %v729_v26, %v30_v17 }
  0x11   :  { %v42_v29 = vshll.u32 %v730_v28, %v30_v17  ;;  %v45_v31 = vshll.u32 %v731_v30, %v30_v17  ;;  %vm48_vm2 = vcmp.lt.s32.totalorder %v29_v16, 1  ;;  %vm49_vm3 = vcmp.lt.s32.totalorder %v29_v16, 2 }
  0x12   :  { %v32_v33 = vshrl.u32 %v727_v22, %v31_v21  ;;  %v34_v34 = vshrl.u32 %v728_v24, %v31_v21  ;;  %v37_v35 = vshrl.u32 %v729_v26, %v31_v21  ;;  %v40_v36 = vshrl.u32 %v730_v28, %v31_v21 }
  0x13   :  { %v43_v37 = vshrl.u32 %v731_v30, %v31_v21  ;;  %v46_v39 = vshrl.u32 %v732_v38, %v31_v21  ;;  %vm51_vm4 = vcmp.lt.s32.totalorder %v29_v16, 4  ;;  %vm50_vm5 = vcmp.lt.s32.totalorder %v29_v16, 3 }
  0x14   :  { %v35_v40 = vor.u32 %v34_v34, %v33_v23  ;;  %v38_v41 = vor.u32 %v37_v35, %v36_v25  ;;  %v41_v42 = vor.u32 %v40_v36, %v39_v27  ;;  %v378_v8 = vshrl.u32 %v728_v24, %v782_v46 }
  0x15   :  { %v44_v44 = vor.u32 %v43_v37, %v42_v29  ;;  %v47_v45 = vor.u32 %v46_v39, %v45_v31  ;;  %v381_v10 = vshrl.u32 %v729_v26, %v782_v46  ;;  %vm393_vm12 = vcmp.lt.s32.totalorder %v792_v58, 2 }
  0x16   :  { %v52_v47 = vsel %vm48_vm2, %v32_v33, %v35_v40  ;;  %v53_v48 = vsel %vm51_vm4, %v41_v42, 2102212464  ;;  %v56_v49 = vsel %vm48_vm2, %v35_v40, %v38_v41  ;;  %v60_v50 = vsel %vm48_vm2, %v38_v41, %v41_v42 }
  0x17   :  { %v54_v51 = vsel %vm50_vm5, %v38_v41, %v53_v48  ;;  %v57_v52 = vsel %vm51_vm4, %v44_v44, 920167782  ;;  %v61_v53 = vsel %vm51_vm4, %v47_v45, 1326507024  ;;  %v810_v39 = vor.u32 %v378_v8, %v377_v62 }
  0x18   :  { %v58_v55 = vsel %vm50_vm5, %v41_v42, %v57_v52  ;;  %v62_v56 = vsel %vm50_vm5, %v44_v44, %v61_v53  ;;  %v795_v59 = vsel %vm49_vm3, %v52_v47, %v54_v51  ;;  %v733_v40 = vmov 0  }
  0x19   :  { %v59_v60 = vsel %vm49_vm3, %v56_v49, %v58_v55  ;;  %v63_v61 = vsel %vm49_vm3, %v60_v50, %v62_v56  ;;  %v386_v47 = vshll.u32 %v730_v28, %v772_v32  ;;  %v819_v50 = vor.u32 %v381_v10, %v380_v9 }
  0x1a   :  { %v67_v63 = vand.u32 65535, %v63_v61  ;;  %v68_v4 = vshrl.u32 %v63_v61, 16  ;;  %v89_v5 = vand.u32 65535, %v59_v60  ;;  %v90_v6 = vshrl.u32 %v59_v60, 16 }
  0x1b   :  { %v387_v55 = vshrl.u32 %v731_v30, %v782_v46  ;;  %v390_v60 = vshrl.u32 %v732_v38, %v782_v46  ;;  %vm395_vm13 = vcmp.lt.s32.totalorder %v792_v58, 4 }
  0x1c   :  { %v69_v11 = vmul.u32 %v67_v63, %v65_v19  ;;  %v70_v12 = vmul.u32 %v68_v4, %v65_v19  ;;  %v71_v14 = vmul.u32 %v67_v63, %v66_v57  ;;  %v72_v16 = vmul.u32 %v68_v4, %v66_v57 }
  0x1d   :  { %v91_v17 = vmul.u32 %v89_v5, %v65_v19  ;;  %v92_v18 = vmul.u32 %v90_v6, %v65_v19  ;;  %v93_v21 = vmul.u32 %v89_v5, %v66_v57  ;;  %v94_v29 = vmul.u32 %v90_v6, %v66_v57 }
  0x1e   :  { %v73_v23 = vshll.u32 %v70_v12, 16  ;;  %v74_v25 = vshrl.u32 %v70_v12, 16  ;;  %v75_v27 = vshll.u32 %v71_v14, 16  ;;  %v76_v31 = vshrl.u32 %v71_v14, 16 }
  0x1f   :  { %v95_v33 = vshll.u32 %v92_v18, 16  ;;  %v96_v34 = vshrl.u32 %v92_v18, 16  ;;  %v97_v35 = vshll.u32 %v93_v21, 16  ;;  %v98_v37 = vshrl.u32 %v93_v21, 16 }
  0x20   :  { %vm77_vm6 = vc.u32 %v69_v11, %v73_v23  ;;  %v79_v36 = vadd.s32 %v73_v23, %v69_v11  ;;  %v384_v19 = vshrl.u32 %v730_v28, %v782_v46  ;;  %v389_v57 = vshll.u32 %v731_v30, %v772_v32 }
  0x21   :  { %v78_v41 = vsel %vm77_vm6, 1, %v733_v40  ;;  %vm99_vm7 = vc.u32 %v91_v17, %v95_v33  ;;  %v101_v42 = vadd.s32 %v95_v33, %v91_v17  ;;  %v388_v63 = vor.u32 %v387_v55, %v386_v47 }
  0x22   :  { %v80_v44 = vadd.s32 %v78_v41, %v72_v16  ;;  %vm81_vm8 = vc.u32 %v79_v36, %v75_v27  ;;  %v100_v45 = vsel %vm99_vm7, 1, %v733_v40  ;;  %v822_v53 = vor.u32 %v384_v19, %v383_v15 }
  0x23   :  { %v82_v48 = vsel %vm81_vm8, 1, %v733_v40  ;;  %v102_v49 = vadd.s32 %v100_v45, %v94_v29  ;;  %vm103_vm9 = vc.u32 %v101_v42, %v97_v35  ;;  %v831_v62 = vadd.s32 %v101_v42, %v97_v35 }
  0x24   :  { %v84_v51 = vadd.s32 %v82_v48, %v80_v44  ;;  %v104_v52 = vsel %vm103_vm9, 1, %v733_v40  ;;  %v391_v5 = vor.u32 %v390_v60, %v389_v57  ;;  %v400_v32 = vsel %vm392_vm10, %v810_v39, %v819_v50 }
  0x25   :  { %v106_v56 = vadd.s32 %v104_v52, %v102_v49  ;;  %v401_v8 = vsel %vm395_vm13, %v388_v63, 920167782  ;;  %v109_v11 = vmul.u32 %v763_v13, %v795_v59  ;;  %v522_v14 = vshrl.u32 %v521_v20, 23 }
  0x26   :  { %v85_v61 = vadd.s32 %v84_v51, %v74_v25  ;;  %v402_v10 = vsel %vm394_vm11, %v822_v53, %v401_v8  ;;  %v404_v16 = vsel %vm392_vm10, %v819_v50, %v822_v53  ;;  %v405_v17 = vsel %vm395_vm13, %v391_v5, 1326507024 }
  0x27   :  { %v107_v4 = vadd.s32 %v106_v56, %v96_v34  ;;  %v403_v12 = vsel %vm393_vm12, %v400_v32, %v402_v10  ;;  %v863_v13 = vshll.u32 %v368_v7, 8  ;;  %v406_v59 = vsel %vm394_vm11, %v388_v63, %v405_v17 }
  0x28   :  { %v836_v6 = vadd.s32 %v85_v61, %v76_v31  ;;  %v433_v18 = vand.u32 65535, %v403_v12  ;;  %v434_v21 = vshrl.u32 %v403_v12, 16  ;;  %v407_v20 = vsel %vm393_vm12, %v404_v16, %v406_v59 }
  0x29   :  { %v108_v9 = vadd.s32 %v107_v4, %v98_v37  ;;  %v409_v25 = vand.u32 65535, %v863_v13  ;;  %v410_v27 = vshrl.u32 %v863_v13, 16  ;;  %v411_v31 = vand.u32 65535, %v407_v20 }
  0x2a   :  { %vm111_vm14 = vc.u32 %v836_v6, %v831_v62  ;;  %v412_v33 = vshrl.u32 %v407_v20, 16  ;;  %v712_v35 = vadd.s32 4294967169, %v522_v14  ;;  %v376_v60 = vshrl.u32 %v727_v22, %v782_v46 }
  0x2b   :  { %v112_v15 = vadd.s32 1, %v108_v9  ;;  %v435_v34 = vmul.u32 %v433_v18, %v409_v25  ;;  %v436_v54 = vmul.u32 %v434_v21, %v409_v25  ;;  %v437_v7 = vmul.u32 %v433_v18, %v410_v27 }
  0x2c   :  { %v413_v37 = vmul.u32 %v411_v31, %v409_v25  ;;  %v414_v41 = vmul.u32 %v412_v33, %v409_v25  ;;  %v415_v42 = vmul.u32 %v411_v31, %v410_v27  ;;  %v416_v47 = vmul.u32 %v412_v33, %v410_v27 }
  0x2d   :  { %v113_v23 = vsel %vm111_vm14, %v112_v15, %v108_v9  ;;  %v439_v19 = vshll.u32 %v436_v54, 16  ;;  %v441_v44 = vshll.u32 %v437_v7, 16  ;;  %v438_v51 = vmul.u32 %v434_v21, %v410_v27 }
  0x2e   :  { %v114_v29 = vadd.s32 %v113_v23, %v109_v11  ;;  %v417_v48 = vshll.u32 %v414_v41, 16  ;;  %v419_v49 = vshll.u32 %v415_v42, 16  ;;  %v528_v57 = vadd.s32 1, %v712_v35 }
  0x2f   :  { %vm443_vm15 = vc.u32 %v435_v34, %v439_v19  ;;  %v445_v52 = vadd.s32 %v439_v19, %v435_v34  ;;  %v418_v5 = vshrl.u32 %v414_v41, 16  ;;  %v440_v9 = vshrl.u32 %v436_v54, 16 }
  0x30   :  { %v115_v36 = vadd.s32 536870912, %v114_v29  ;;  %vm421_vm0 = vc.u32 %v413_v37, %v417_v48  ;;  %v423_v56 = vadd.s32 %v417_v48, %v413_v37  ;;  %v444_v63 = vsel %vm443_vm15, 1, %v733_v40 }
  0x31   :  { %v422_v61 = vsel %vm421_vm0, 1, %v733_v40  ;;  %vm447_vm1 = vc.u32 %v445_v52, %v441_v44  ;;  %v446_v10 = vadd.s32 %v444_v63, %v438_v51  ;;  %v397_v46 = vsel %vm395_vm13, %v822_v53, 2102212464 }
  0x32   :  { %v871_v45 = vshrl.u32 %v115_v36, 30  ;;  %v424_v32 = vadd.s32 %v422_v61, %v416_v47  ;;  %vm425_vm2 = vc.u32 %v423_v56, %v419_v49  ;;  %v448_v11 = vsel %vm447_vm1, 1, %v733_v40 }
  0x33   :  { %v426_v8 = vsel %vm425_vm2, 1, %v733_v40  ;;  %v420_v15 = vshrl.u32 %v415_v42, 16  ;;  %v442_v16 = vshrl.u32 %v437_v7, 16  ;;  %v450_v17 = vadd.s32 %v448_v11, %v446_v10 }
  0x34   :  { %v117_v55 = vshll.u32 %v871_v45, 30  ;;  %v428_v14 = vadd.s32 %v426_v8, %v424_v32  ;;  %vm529_vm4 = vcmp.gt.s32.totalorder %v528_v57, 0  ;;  %v396_v25 = vsel %vm392_vm10, %v376_v60, %v810_v39 }
  0x35   :  { %v451_v23 = vadd.s32 %v450_v17, %v440_v9  ;;  %v530_v20 = vsel %vm529_vm4, %v528_v57, 0  ;;  %v398_v27 = vsel %vm394_vm11, %v819_v50, %v397_v46  ;;  %v891_v31 = vadd.s32 %v445_v52, %v441_v44 }
  0x36   :  { %v118_v4 = vsub.s32 %v114_v29, %v117_v55  ;;  %v429_v18 = vadd.s32 %v428_v14, %v418_v5  ;;  %v532_v34 = vand.u32 31, %v530_v20  ;;  %v110_v54 = vadd.s32 %v831_v62, %v836_v6 }
  0x37   :  { %v452_v33 = vadd.s32 %v451_v23, %v442_v16  ;;  %v399_v7 = vsel %vm393_vm12, %v396_v25, %v398_v27  ;;  %v518_v36 = vand.u32 2147483647, %v752_v1  ;;  %v140_v48 = vsub.s32 4, %v871_v45 }
  0x38   :  { %vm119_vm3 = vcmp.lt.s32.totalorder %v118_v4, 0  ;;  %v120_v12 = vsub.s32 0, %v118_v4  ;;  %v889_v53 = vadd.s32 %v429_v18, %v420_v15  ;;  %v453_v42 = vmul.u32 %v863_v13, %v399_v7 }
  0x39   :  { %v456_v39 = vadd.s32 1, %v452_v33  ;;  %v901_v19 = vsub.s32 32, %v532_v34  ;;  %v525_v49 = vand.u32 8388607, %v518_v36  ;;  %v906_v52 = vshrl.u32 %v530_v20, 5 }
  0x3a   :  { %v121_v59 = vsel %vm119_vm3, %v120_v12, %v118_v4  ;;  %vm455_vm6 = vc.u32 %v889_v53, %v891_v31  ;;  %v538_v55 = vshll.u32 %v728_v24, %v532_v34  ;;  %v541_v60 = vshll.u32 %v729_v26, %v532_v34 }
  0x3b   :  { %v122_v21 = vclz %v121_v59  ;;  %v457_v6 = vsel %vm455_vm6, %v456_v39, %v452_v33  ;;  %v539_v13 = vshrl.u32 %v729_v26, %v901_v19  ;;  %v542_v61 = vshrl.u32 %v730_v28, %v901_v19 }
  0x3c   :  { %v458_v51 = vadd.s32 %v457_v6, %v453_v42  ;;  %v544_v5 = vshll.u32 %v730_v28, %v532_v34  ;;  %v545_v32 = vshrl.u32 %v731_v30, %v901_v19  ;;  %v536_v9 = vshrl.u32 %v728_v24, %v901_v19 }
  0x3d   :  { %v704_v29 = vadd.s32 4294967294, %v122_v21  ;;  %v547_v10 = vshll.u32 %v731_v30, %v532_v34  ;;  %v548_v26 = vshrl.u32 %v732_v38, %v901_v19  ;;  %v526_v12 = vor.u32 8388608, %v525_v49 }
  0x3e   :  { %v459_v63 = vadd.s32 536870912, %v458_v51  ;;  %v925_v46 = vor.u32 %v539_v13, %v538_v55  ;;  %v927_v15 = vor.u32 %v542_v61, %v541_v60  ;;  %v546_v28 = vor.u32 %v545_v32, %v544_v5 }
  0x3f   :  { %vm705_vm5 = vcmp.lt.s32.totalorder %v704_v29, 0  ;;  %v549_v16 = vor.u32 %v548_v26, %v547_v10  ;;  %vm18_vm7 = vcmp.lt.s32.totalorder %v756_v2, 0  ;;  %vm550_vm8 = vcmp.lt.s32.totalorder %v906_v52, 1 }
  0x40   :  { %v125_v35 = vsel %vm705_vm5, 0, %v704_v29  ;;  %v923_v11 = vshrl.u32 %v459_v63, 30  ;;  %vm553_vm9 = vcmp.lt.s32.totalorder %v906_v52, 4  ;;  %vm17_vm10 = vcmp.le.f32.partialorder %v16_v3, 0.7853982 }
  0x41   :  { %v126_v37 = vsub.s32 32, %v125_v35  ;;  %v127_v50 = vshll.u32 %v118_v4, %v125_v35  ;;  %v130_v41 = vsub.s32 4294967266, %v125_v35  ;;  %v535_v4 = vshll.u32 %v727_v22, %v532_v34 }
  0x42   :  { %v461_v17 = vshll.u32 %v923_v11, 30  ;;  %v141_v30 = vsel %vm18_vm7, %v140_v48, %v871_v45  ;;  %vm551_vm11 = vcmp.lt.s32.totalorder %v906_v52, 2  ;;  %vm552_vm12 = vcmp.lt.s32.totalorder %v906_v52, 3 }
  0x43   :  { %v128_v44 = vshrl.u32 %v110_v54, %v126_v37  ;;  %v131_v62 = vadd.s32 127, %v130_v41  ;;  %v936_v38 = vor.u32 %v536_v9, %v535_v4  ;;  %v940_v18 = vshll.u32 %v526_v12, 8 }
  0x44   :  { %v462_v59 = vsub.s32 %v458_v51, %v461_v17  ;;  %v559_v23 = vsel %vm553_vm9, %v546_v28, 920167782  ;;  %v562_v3 = vsel %vm550_vm8, %v925_v46, %v927_v15  ;;  %v563_v45 = vsel %vm553_vm9, %v549_v16, 1326507024 }
  0x45   :  { %v129_v47 = vor.u32 %v128_v44, %v127_v50  ;;  %v132_v58 = vshll.u32 %v131_v62, 23  ;;  %v143_v25 = vsel %vm17_vm10, 0, %v141_v30  ;;  %v558_v33 = vsel %vm550_vm8, %v936_v38, %v925_v46 }
  0x46   :  { %vm463_vm13 = vcmp.lt.s32.totalorder %v462_v59, 0  ;;  %v464_v27 = vsub.s32 0, %v462_v59  ;;  %v560_v34 = vsel %vm552_vm12, %v927_v15, %v559_v23  ;;  %v564_v54 = vsel %vm552_vm12, %v546_v28, %v563_v45 }
  0x47   :  { %v133_v56 = vor.u32 4788187, %v132_v58  ;;  %v136_v57 = vcvt.s32.f32 %v129_v47  ;;  %v565_v35 = vsel %vm551_vm11, %v562_v3, %v564_v54  ;;  %v567_v39 = vand.u32 65535, %v940_v18 }
  0x48   :  { %v465_v7 = vsel %vm463_vm13, %v464_v27, %v462_v59  ;;  %v964_v37 = vshrl.u32 %v940_v18, 16  ;;  %v569_v44 = vand.u32 65535, %v565_v35  ;;  %v570_v62 = vshrl.u32 %v565_v35, 16  ;;  %v991_v27 = vld [vmem:[%s1110_s0 + $0x2] sm:$0x1] }
  0x49   :  { %v134_v8 = vand.u32 2147483647, %v133_v56  ;;  %v466_v42 = vclz %v465_v7  ;;  %v968_v48 = vsel %vm551_vm11, %v558_v33, %v560_v34  ;;  %v314_v49 = vadd.s32 3, %v143_v25 }
  0x4a   :  { %v571_v51 = vmul.u32 %v569_v44, %v567_v39  ;;  %v970_v55 = vmul.u32 %v570_v62, %v567_v39  ;;  %v973_v13 = vmul.u32 %v569_v44, %v964_v37  ;;  %v454_v60 = vadd.s32 %v891_v31, %v889_v53 }
  0x4b   :  { %v137_v14 = vmul.f32 %v136_v57, %v134_v8  ;;  %v710_v58 = vadd.s32 4294967294, %v466_v42  ;;  %v977_v61 = vand.u32 3, %v143_v25  ;;  %v592_v5 = vshrl.u32 %v968_v48, 16 }
  0x4c   :  { %v575_v4 = vshll.u32 %v970_v55, 16  ;;  %vm159_vm15 = vweird.f32 %v756_v2  ;;  %v315_v26 = vand.u32 3, %v314_v49  ;;  %v591_v16 = vand.u32 65535, %v968_v48 }
  0x4d   :  { %v138_v24 = vxor.u32 2147483648, %v137_v14  ;;  %vm711_vm14 = vcmp.lt.s32.totalorder %v710_v58, 0  ;;  %vm165_vm4 = vcmp.eq.s32.totalorder %v977_v61, 2  ;;  %vm162_vm6 = vcmp.eq.s32.totalorder %v977_v61, 0 }
  0x4e   :  { %v469_v63 = vsel %vm711_vm14, 0, %v710_v58  ;;  %vm579_vm0 = vc.u32 %v571_v51, %v575_v4  ;;  %v581_v30 = vadd.s32 %v575_v4, %v571_v51  ;;  %vm317_vm1 = vcmp.eq.s32.totalorder %v315_v26, 0 }
  0x4f   :  { %v139_v21 = vsel %vm18_vm7, %v138_v24, %v137_v14  ;;  %v470_v9 = vsub.s32 32, %v469_v63  ;;  %v471_v10 = vshll.u32 %v462_v59, %v469_v63  ;;  %v474_v12 = vsub.s32 4294967266, %v469_v63 }
  0x50   :  { %v142_v20 = vsel %vm17_vm10, %v756_v2, %v139_v21  ;;  %v577_v14 = vshll.u32 %v973_v13, 16  ;;  %v574_v24 = vmul.u32 %v570_v62, %v964_v37  ;;  %v985_v21 = vmul.u32 %v592_v5, %v567_v39 }
  0x51   :  { %v144_v29 = vmul.f32 %v142_v20, %v142_v20  ;;  %v472_v28 = vshrl.u32 %v454_v60, %v470_v9  ;;  %v475_v17 = vadd.s32 127, %v474_v12  ;;  %v580_v45 = vsel %vm579_vm0, 1, %v733_v40 }
  0x52   :  { %vm320_vm2 = vcmp.eq.s32.totalorder %v315_v26, 2  ;;  %vm583_vm3 = vc.u32 %v581_v30, %v577_v14  ;;  %vm316_vm5 = vcmp.lt.s32.totalorder %v315_v26, 2  ;;  %v593_v54 = vmul.u32 %v591_v16, %v567_v39 }
  0x53   :  { %v145_v50 = vmul.f32 -0.001358992, %v144_v29  ;;  %v152_v41 = vmul.f32 -0.00019511016, %v144_v29  ;;  %v473_v3 = vor.u32 %v472_v28, %v471_v10  ;;  %v476_v25 = vshll.u32 %v475_v17, 23 }
  0x54   :  { %v584_v62 = vsel %vm583_vm3, 1, %v733_v40  ;;  %v534_v58 = vshrl.u32 %v727_v22, %v901_v19  ;;  %vm161_vm7 = vcmp.lt.s32.totalorder %v977_v61, 2  ;;  %v330_v49 = vmul.f32 0.2, %v991_v27 }
  0x55   :  { %v146_v6 = vadd.f32 0.041655596, %v145_v50  ;;  %v153_v47 = vadd.f32 0.008332121, %v152_v41  ;;  %v477_v7 = vor.u32 4788187, %v476_v25  ;;  %v480_v35 = vcvt.s32.f32 %v473_v3 }
  0x56   :  { %v582_v50 = vadd.s32 %v580_v45, %v574_v24  ;;  %v595_v41 = vmul.u32 %v591_v16, %v964_v37  ;;  %v555_v51 = vsel %vm553_vm9, %v927_v15, 2102212464  ;;  %v576_v63 = vshrl.u32 %v970_v55, 16 }
  0x57   :  { %v147_v56 = vmul.f32 %v146_v6, %v144_v29  ;;  %v154_v57 = vmul.f32 %v153_v47, %v144_v29  ;;  %v597_v6 = vshll.u32 %v985_v21, 16  ;;  %v478_v39 = vand.u32 2147483647, %v477_v7 }
  0x58   :  { %v586_v4 = vadd.s32 %v584_v62, %v582_v50  ;;  %v484_v19 = vsub.s32 4, %v923_v11  ;;  %vm362_vm9 = vcmp.lt.s32.totalorder %v747_v0, 0  ;;  %v554_v15 = vsel %vm550_vm8, %v534_v58, %v936_v38 }
  0x59   :  { %v148_v32 = vadd.f32 -0.4999988, %v147_v56  ;;  %v155_v8 = vadd.f32 -0.16666654, %v154_v57  ;;  %v596_v56 = vmul.u32 %v592_v5, %v964_v37  ;;  %v481_v60 = vmul.f32 %v480_v35, %v478_v39 }
  0x5a   :  { %vm601_vm10 = vc.u32 %v593_v54, %v597_v6  ;;  %v556_v37 = vsel %vm552_vm12, %v925_v46, %v555_v51  ;;  %vm1036_vm13 = vcmp.le.f32.partialorder %v360_v43, 0.7853982  ;;  %v603_v10 = vadd.s32 %v597_v6, %v593_v54 }
  0x5b   :  { %v149_v53 = vmul.f32 %v148_v32, %v144_v29  ;;  %v156_v31 = vmul.f32 %v155_v8, %v144_v29  ;;  %v996_v29 = vld [vmem:[%s1110_s0 + $0x3] sm:$0x1]  ;;  %v599_v32 = vshll.u32 %v595_v41, 16  ;;  %v482_v5 = vxor.u32 2147483648, %v481_v60 }
  0x5c   :  { %v1008_v47 = vmul.f32 0.3, %v996_v29  ;;  %v602_v9 = vsel %vm601_vm10, 1, %v733_v40  ;;  %v578_v12 = vshrl.u32 %v973_v13, 16  ;;  %v587_v14 = vadd.s32 %v586_v4, %v576_v63 }
  0x5d   :  { %v150_v23 = vadd.f32 1.0, %v149_v53  ;;  %v157_v59 = vadd.f32 1.0, %v156_v31  ;;  %v604_v38 = vadd.s32 %v602_v9, %v596_v56  ;;  %v483_v53 = vsel %vm362_vm9, %v482_v5, %v481_v60 }
  0x5e   :  { %v485_v31 = vsel %vm362_vm9, %v484_v19, %v923_v11  ;;  %v598_v46 = vshrl.u32 %v985_v21, 16  ;;  %vm605_vm8 = vc.u32 %v603_v10, %v599_v32  ;;  %v486_v16 = vsel %vm1036_vm13, %v747_v0, %v483_v53 }
  0x5f   :  { %v158_v33 = vmul.f32 %v157_v59, %v142_v20  ;;  %v166_v34 = vxor.u32 2147483648, %v150_v23  ;;  %v1005_v20 = vmul.f32 0.1, %v991_v27  ;;  %v606_v17 = vsel %vm605_vm8, 1, %v733_v40 }
  0x60   :  { %v488_v24 = vmul.f32 %v486_v16, %v486_v16  ;;  %v600_v30 = vshrl.u32 %v595_v41, 16  ;;  %v608_v59 = vadd.s32 %v606_v17, %v604_v38  ;;  %v557_v21 = vsel %vm551_vm11, %v554_v15, %v556_v37 }
  0x61   :  { %v163_v42 = vxor.u32 2147483648, %v158_v33  ;;  %v322_v44 = vsel %vm320_vm2, %v166_v34, %v158_v33  ;;  %v167_v43 = vsel %vm165_vm4, %v166_v34, %v158_v33  ;;  %v1055_v3 = vadd.s32 %v587_v14, %v578_v12 }
  0x62   :  { %v1057_v45 = vadd.s32 %v603_v10, %v599_v32  ;;  %v487_v25 = vsel %vm1036_vm13, 0, %v485_v31  ;;  %v489_v33 = vmul.f32 -0.001358992, %v488_v24  ;;  %v496_v34 = vmul.f32 -0.00019511016, %v488_v24 }
  0x63   :  { %v319_v48 = vsel %vm317_vm1, %v150_v23, %v163_v42  ;;  %v164_v13 = vsel %vm162_vm6, %v150_v23, %v163_v42  ;;  %v609_v40 = vadd.s32 %v608_v59, %v598_v46  ;;  %v326_v54 = vmul.f32 %v991_v27, %v1005_v20 }
  0x64   :  { %v323_v57 = vsel %vm316_vm5, %v319_v48, %v322_v44  ;;  %v168_v23 = vsel %vm161_vm7, %v164_v13, %v167_v43  ;;  %v328_v52 = vmul.f32 %v996_v29, %v1008_v47  ;;  %v490_v7 = vadd.f32 0.041655596, %v489_v33 }
  0x65   :  { %v1023_v22 = vsel %vm159_vm15, nan, %v323_v57  ;;  %v497_v35 = vadd.f32 0.008332121, %v496_v34  ;;  %v610_v50 = vadd.s32 %v609_v40, %v600_v30  ;;  %v331_v41 = vmul.f32 %v996_v29, %v330_v49 }
  0x66   :  { %v334_v8 = vmul.f32 0.1, %v1023_v22  ;;  %v504_v42 = vadd.s32 3, %v487_v25  ;;  %v611_v44 = vmul.u32 %v940_v18, %v557_v21  ;;  %vm613_vm11 = vc.u32 %v1055_v3, %v1057_v45 }
  0x67   :  { %v1073_v61 = vsel %vm159_vm15, nan, %v168_v23  ;;  %v491_v62 = vmul.f32 %v490_v7, %v488_v24  ;;  %v498_v6 = vmul.f32 %v497_v35, %v488_v24  ;;  %v614_v39 = vadd.s32 1, %v610_v50 }
  0x68   :  { %v335_v26 = vmul.f32 %v334_v8, %v1023_v22  ;;  %v329_v57 = vadd.f32 %v328_v52, %v326_v54  ;;  %v332_v49 = vmul.f32 %v331_v41, %v1073_v61  ;;  %v354_v60 = vmul.f32 0.04, %v1023_v22 }
  0x69   :  { %v492_v58 = vadd.f32 -0.4999988, %v491_v62  ;;  %v499_v48 = vadd.f32 -0.16666654, %v498_v6  ;;  %v615_v51 = vsel %vm613_vm11, %v614_v39, %v610_v50  ;;  %v505_v32 = vand.u32 3, %v504_v42 }
  0x6a   :  { %v336_v28 = vadd.f32 0.2, %v335_v26  ;;  %v616_v18 = vadd.s32 %v615_v51, %v611_v44  ;;  %v333_v9 = vsub.f32 %v329_v57, %v332_v49  ;;  %v355_v10 = vmul.f32 %v354_v60, %v1073_v61 }
  0x6b   :  { %v493_v4 = vmul.f32 %v492_v58, %v488_v24  ;;  %v500_v19 = vmul.f32 %v499_v48, %v488_v24  ;;  %vm507_vm0 = vcmp.eq.s32.totalorder %v505_v32, 0  ;;  %vm510_vm1 = vcmp.eq.s32.totalorder %v505_v32, 2 }
  0x6c   :  { %v337_v11 = vmul.f32 0.2, %v336_v28  ;;  %v617_v15 = vadd.s32 536870912, %v616_v18  ;;  %v356_v28 = vmul.f32 %v355_v10, %v333_v9  ;;  %vm506_vm3 = vcmp.lt.s32.totalorder %v505_v32, 2 }
  0x6d   :  { %v494_v55 = vadd.f32 1.0, %v493_v4  ;;  %v501_v5 = vadd.f32 1.0, %v500_v19  ;;  %vm503_vm5 = vweird.f32 %v747_v0  ;;  %v612_v52 = vadd.s32 %v1057_v45, %v1055_v3 }
  0x6e   :  { %725 = vrcp.f32 %v337_v11  ;;  %vm343_vm12 = vweird.f32 %v337_v11  ;;  %v347_v2 = vand.u32 2147483647, %v337_v11  ;;  %v349_v8 = vand.u32 2147483648, %v337_v11 }
  0x6f   :  { %v1078_v26 = vshrl.u32 %v617_v15, 30  ;;  %v502_v14 = vmul.f32 %v501_v5, %v486_v16  ;;  %v511_v38 = vxor.u32 2147483648, %v494_v55  ;;  %v353_v16 = vmul.f32 %v331_v41, %v1023_v22 }
  0x70   :  { %v350_v53 = vor.u32 1.1754944e-38, %v349_v8  ;;  %vm348_vm2 = vcmp.eq.f32.partialorder %v347_v2, 8.507059e+37  ;;  %v675_v0 = vmul.f32 %v996_v29, %v1073_v61  ;;  %v679_v6 = vmul.f32 %v1005_v20, %v1073_v61 }
  0x71   :  { %v619_v31 = vshll.u32 %v1078_v26, 30  ;;  %v508_v43 = vxor.u32 2147483648, %v502_v14  ;;  %v512_v30 = vsel %vm510_vm1, %v511_v38, %v502_v14  ;;  %vm520_vm7 = vcmp.lt.s32.totalorder %v752_v1, 0 }
  0x72   :  { %v676_v58 = vsub.f32 %v991_v27, %v675_v0  ;;  %v680_v45 = vsub.f32 %v1008_v47, %v679_v6  ;;  %v642_v27 = vsub.s32 4, %v1078_v26  ;;  %vm519_vm10 = vcmp.le.f32.partialorder %v518_v36, 0.7853982 }
  0x73   :  { %v620_v17 = vsub.s32 %v616_v18, %v619_v31  ;;  %v509_v24 = vsel %vm507_vm0, %v494_v55, %v508_v43  ;;  %vm661_vm11 = vweird.f32 %v752_v1 }
  0x74   :  { %v726_v56 = vpop.eup %725  ;;  %v513_v25 = vsel %vm506_vm3, %v509_v24, %v512_v30  ;;  %v677_v51 = vmul.f32 0.2, %v676_v58  ;;  %v681_v49 = vmul.f32 2.0, %v680_v45  ;;  %v643_v32 = vsel %vm520_vm7, %v642_v27, %v1078_v26 }
  0x75   :  { %v339_v63 = vmul.f32 %v726_v56, %v337_v11  ;;  %vm344_vm14 = vweird.f32 %v726_v56  ;;  %vm621_vm4 = vcmp.lt.s32.totalorder %v620_v17, 0  ;;  %v622_v11 = vsub.s32 0, %v620_v17 }
  0x76   :  { %vm345_vm15 = vmor %vm343_vm12, %vm344_vm14  ;;  %v514_v40 = vsel %vm503_vm5, nan, %v513_v25  ;;  %v645_v15 = vsel %vm519_vm10, 0, %v643_v32 }
  0x77   :  { %v340_v37 = vsub.f32 1.0, %v339_v63  ;;  %v623_v33 = vsel %vm621_vm4, %v622_v11, %v620_v17  ;;  %v515_v7 = vmul.f32 2.94, %v514_v40  ;;  %v662_v10 = vadd.s32 3, %v645_v15 }
  0x78   :  { %v624_v34 = vclz %v623_v33 }
  0x79   :  { %v341_v12 = vmul.f32 %v726_v56, %v340_v37 }
  0x7a   :  { %v713_v23 = vadd.s32 4294967294, %v624_v34 }
  0x7b   :  { %v342_v46 = vadd.f32 %v726_v56, %v341_v12 }
  0x7c   :  { %vm714_vm6 = vcmp.lt.s32.totalorder %v713_v23, 0 }
  0x7d   :  { %v346_v13 = vsel %vm345_vm15, %v726_v56, %v342_v46  ;;  %v627_v35 = vsel %vm714_vm6, 0, %v713_v23 }
  0x7e   :  { %v351_v59 = vsel %vm348_vm2, %v350_v53, %v346_v13  ;;  %v628_v50 = vsub.s32 32, %v627_v35  ;;  %v629_v42 = vshll.u32 %v620_v17, %v627_v35  ;;  %v632_v44 = vsub.s32 4294967266, %v627_v35 }
  0x7f   :  { %v357_v21 = vmul.f32 %v356_v28, %v351_v59  ;;  %v678_v60 = vmul.f32 %v677_v51, %v351_v59  ;;  %v682_v29 = vmul.f32 %v681_v49, %v351_v59  ;;  %v663_v53 = vand.u32 3, %v662_v10 }
  0x80   :  { %v630_v22 = vshrl.u32 %v612_v52, %v628_v50  ;;  %v633_v41 = vadd.s32 127, %v632_v44 }
  0x81   :  { %v358_v54 = vsub.f32 %v353_v16, %v357_v21  ;;  %683 = vst [vmem:[%s1111_s1] sm:$0x1] %v678_v60  ;;  %v687_v20 = vmul.f32 0.1, %v678_v60  ;;  %vm668_vm9 = vcmp.eq.s32.totalorder %v663_v53, 2  ;;  %vm665_vm13 = vcmp.eq.s32.totalorder %v663_v53, 0 }
  0x82   :  { %v631_v48 = vor.u32 %v630_v22, %v629_v42  ;;  %v634_v3 = vshll.u32 %v633_v41, 23  ;;  %715 = vst [vmem:[%s1111_s1 + $0x1] sm:$0x1] %v682_v29  ;;  %vm664_vm8 = vcmp.lt.s32.totalorder %v663_v53, 2  ;;  %v692_v33 = vmul.f32 0.1, %v682_v29 }
  0x83   :  { %v359_v62 = vmul.f32 %v358_v54, %v351_v59 }
  0x84   :  { %v635_v56 = vor.u32 4788187, %v634_v3  ;;  %v638_v57 = vcvt.s32.f32 %v631_v48 }
  0x85   :  { %v516_v39 = vadd.f32 %v515_v7, %v359_v62  ;;  %v517_v59 = vsub.f32 0.0, %v359_v62 }
  0x86   :  { %v636_v63 = vand.u32 2147483647, %v635_v56 }
  0x87   :  { %v686_v18 = vsub.f32 0.0, %v516_v39 }
  0x88   :  { %v639_v61 = vmul.f32 %v638_v57, %v636_v63 }
  0x89   :  { %v688_v47 = vsub.f32 %v686_v18, %v687_v20 }
  0x8a   :  { %v640_v4 = vxor.u32 2147483648, %v639_v61 }
  0x8b   :  { %716 = vst [vmem:[%s1111_s1 + $0x2] sm:$0x1] %v688_v47 }
  0x8c   :  { %v641_v19 = vsel %vm520_vm7, %v640_v4, %v639_v61 }
  0x8d   :  { %v644_v2 = vsel %vm519_vm10, %v752_v1, %v641_v19 }
  0x8e   :  { %v646_v8 = vmul.f32 %v644_v2, %v644_v2 }
  0x90   :  { %v647_v37 = vmul.f32 -0.001358992, %v646_v8  ;;  %v654_v55 = vmul.f32 -0.00019511016, %v646_v8 }
  0x92   :  { %v648_v5 = vadd.f32 0.041655596, %v647_v37  ;;  %v655_v9 = vadd.f32 0.008332121, %v654_v55 }
  0x94   :  { %v649_v12 = vmul.f32 %v648_v5, %v646_v8  ;;  %v656_v14 = vmul.f32 %v655_v9, %v646_v8 }
  0x96   :  { %v650_v36 = vadd.f32 -0.4999988, %v649_v12  ;;  %v657_v38 = vadd.f32 -0.16666654, %v656_v14 }
  0x98   :  { %v651_v31 = vmul.f32 %v650_v36, %v646_v8  ;;  %v658_v46 = vmul.f32 %v657_v38, %v646_v8 }
  0x9a   :  { %v652_v43 = vadd.f32 1.0, %v651_v31  ;;  %v659_v28 = vadd.f32 1.0, %v658_v46 }
  0x9c   :  { %v660_v26 = vmul.f32 %v659_v28, %v644_v2  ;;  %v669_v17 = vxor.u32 2147483648, %v652_v43 }
  0x9e   :  { %v666_v13 = vxor.u32 2147483648, %v660_v26  ;;  %v670_v24 = vsel %vm668_vm9, %v669_v17, %v660_v26 }
  0xa0   :  { %v667_v30 = vsel %vm665_vm13, %v652_v43, %v666_v13 }
  0xa1   :  { %v671_v11 = vsel %vm664_vm8, %v667_v30, %v670_v24 }
  0xa2   :  { %v672_v16 = vsel %vm661_vm11, nan, %v671_v11 }
  0xa3   :  { %v673_v21 = vmul.f32 0.98, %v672_v16 }
  0xa5   :  { %v674_v25 = vadd.f32 %v673_v21, %v517_v59 }
  0xa7   :  { %v691_v34 = vsub.f32 0.0, %v674_v25 }
  0xa9   :  { %v693_v40 = vsub.f32 %v691_v34, %v692_v33 }
  0xab   :  { %717 = vst [vmem:[%s1111_s1 + $0x3] sm:$0x1] %v693_v40 }

</bundles_post_ra>
